<compile_context>
chip_gen: v6e
topology: v6e:2x2x1
jax: 0.10.0
libtpu: 0.0.40
codegen_flags: <defaults>
</compile_context>

<pallas_src>
import functools

import jax
import jax.numpy as jnp
from jax.experimental import pallas as pl
from jax.experimental.pallas import tpu as pltpu


def _lora_kernel(x_ref, a_ref, b_ref, o_ref, *, scale):
    # t = (x_tile @ A) * scale   -- (TM, r) intermediate, f32 accumulation.
    t = jnp.dot(x_ref[...], a_ref[...],
                preferred_element_type=jnp.float32) * scale
    # z = t @ B
    z = jnp.dot(t, b_ref[...], preferred_element_type=jnp.float32)
    o_ref[...] = z.astype(o_ref.dtype)


def _round_up(x, m):
    return ((x + m - 1) // m) * m


def _round_down(x, m):
    return (x // m) * m


def _padded_bytes(rows, cols, dtype):
    """VMEM footprint of a (rows, cols) tile after (sublane, 128-lane) padding."""
    itemsize = jnp.dtype(dtype).itemsize
    sublane = max(8, 32 // itemsize)          # f32: 8, bf16: 16, int8: 32
    return _round_up(rows, sublane) * _round_up(cols, 128) * itemsize


def _vmem_budget_bytes():
    """Generation-aware VMEM budget, leaving headroom for compiler scratch."""
    try:
        cap = int(pltpu.get_tpu_info().vmem_capacity_bytes)
    except Exception:
        cap = 64 << 20        # conservative fallback: v7x per-TensorCore VMEM
    # ~48-52 MiB on 64 MiB parts (v7x), ~100 MiB on 128 MiB parts (v5e/v6e).
    return min(int(cap * 0.80), cap - (12 << 20))


def _pick_tm(m, row_in_bytes, row_out_bytes, vmem_budget, resident_bytes,
             target_tile_bytes=6 << 20):
    """Byte-adaptive M-tile, clamped to the VMEM budget; >=2 tiles when M>=512."""
    # Aim for multi-MiB input tiles so the ~0.35us/step grid overhead is
    # amortized and DMA sits near the HBM roofline.
    tm = _round_down(target_tile_bytes // max(row_in_bytes, 1), 8)
    tm = max(256, min(4096, tm))
    # Double-buffered x/out tiles + the (TM, 128) f32 intermediate must fit
    # next to the resident A/B, with slack for compiler-internal scratch.
    per_row = 2 * (row_in_bytes + row_out_bytes) + 128 * 4
    avail = vmem_budget - resident_bytes - (4 << 20)
    if avail > 0:
        tm = min(tm, max(8, _round_down(avail // per_row, 8)))
    # Megacore (v7x has 2 TCs): give the "parallel" M axis at least 2 tiles
    # whenever there is enough work.
    if m >= 512:
        tm = min(tm, _round_up(-(-m // 2), 8))
    if tm >= m:
        return m              # single full-extent block (no (8,128) constraint)
    return max(8, tm)


def lora_forward(x, A, B, alpha, rank=None, *, tm=None):
    """x: (..., d_in) -> (..., d_out). A: (d_in, rank), B: (rank, d_out)."""
    assert x.ndim >= 2, "Input tensor must have at least 2 dimensions."
    d_in, r = A.shape
    rb, d_out = B.shape
    assert rb == r, f"A/B rank mismatch: {r} vs {rb}."
    if rank is not None:
        assert rank == r, f"rank argument ({rank}) disagrees with A.shape[1] ({r})."
    assert x.shape[-1] == d_in, (
        f"Expected the last dimension of input to be {d_in}, got {x.shape[-1]}.")

    lead = x.shape[:-1]
    M = 1
    for s in lead:
        M *= s
    x2 = x.reshape(M, d_in)
    out_dtype = x.dtype
    scale = float(alpha) / float(r)          # derive from A.shape[1], not the arg

    itemsize_x = jnp.dtype(x2.dtype).itemsize
    itemsize_o = jnp.dtype(out_dtype).itemsize

    # Resident operands (constant index_map, single-buffered) with their real
    # padded VMEM footprint: A's r lanes pad to 128, B's r rows pad to 8.
    resident = (_padded_bytes(d_in, r, A.dtype)
                + _padded_bytes(r, d_out, B.dtype))

    vmem_budget = _vmem_budget_bytes()
    row_in_bytes = _round_up(d_in, 128) * itemsize_x
    row_out_bytes = _round_up(d_out, 128) * itemsize_o

    if tm is None:
        TM = _pick_tm(M, row_in_bytes, row_out_bytes, vmem_budget, resident)
    else:
        TM = min(M, max(8, _round_down(int(tm), 8)))
        if TM >= M:
            TM = M
    n_tiles = pl.cdiv(M, TM)

    # Scoped-VMEM limit: what this tiling actually needs, within the budget.
    needed = (TM * (2 * (row_in_bytes + row_out_bytes) + 128 * 4)
              + resident + (8 << 20))
    vmem_limit = int(min(vmem_budget, max(needed, 32 << 20)))

    # Tiny-FLOP, bandwidth-heavy cost model (no padded traffic anymore).
    cost = pl.CostEstimate(
        flops=2 * M * r * (d_in + d_out),
        transcendentals=0,
        bytes_accessed=(M * d_in * itemsize_x + M * d_out * itemsize_o
                        + d_in * r * jnp.dtype(A.dtype).itemsize
                        + r * d_out * jnp.dtype(B.dtype).itemsize),
    )

    kernel = functools.partial(_lora_kernel, scale=scale)

    out = pl.pallas_call(
        kernel,
        out_shape=jax.ShapeDtypeStruct((M, d_out), out_dtype),
        grid=(n_tiles,),
        in_specs=[
            pl.BlockSpec((TM, d_in), lambda i: (i, 0)),            # streamed x
            pl.BlockSpec((d_in, r), lambda i: (0, 0),
                         pipeline_mode=pl.Buffered(1)),            # A resident
            pl.BlockSpec((r, d_out), lambda i: (0, 0),
                         pipeline_mode=pl.Buffered(1)),            # B resident
        ],
        out_specs=pl.BlockSpec((TM, d_out), lambda i: (i, 0)),
        compiler_params=pltpu.CompilerParams(
            dimension_semantics=("parallel",),
            vmem_limit_bytes=vmem_limit,
        ),
        cost_estimate=cost,
    )(x2, A, B)

    return out.reshape(*lead, d_out)


if __name__ == "__main__":
    # Module config (small, consistent with the forward's contract).
    rank, alpha = 4, 8.0
    d_in, d_out = 32, 32
    batch, seq = 2, 8

    key = jax.random.PRNGKey(0)
    kx, ka, kb = jax.random.split(key, 3)

    # Deterministic parameter init mirroring LoRALayer.__init__:
    #   A ~ Normal(0, 0.01), B = zeros
    A = (0.01 * jax.random.normal(ka, (d_in, rank))).astype(jnp.float32)
    B = jnp.zeros((rank, d_out), dtype=jnp.float32)
    x = jax.random.normal(kx, (batch, seq, d_in), dtype=jnp.float32)

    # 1) Exact module init (B == 0  ->  output is all zeros).
    z = jax.block_until_ready(lora_forward(x, A, B, alpha, rank))
    z_ref = x @ ((A @ B) * (alpha / rank))
    assert z.shape == (batch, seq, d_out)
    assert jnp.allclose(z, z_ref, atol=1e-5, rtol=1e-5)

    # 2) Non-trivial B to exercise the re-associated math path.
    B2 = (0.02 * jax.random.normal(kb, (rank, d_out))).astype(jnp.float32)
    z2 = jax.block_until_ready(lora_forward(x, A, B2, alpha, rank))
    z2_ref = x @ ((A @ B2) * (alpha / rank))
    assert jnp.allclose(z2, z2_ref, atol=1e-5, rtol=1e-5)

    # 3) Larger M with auto tiling: M = 1000 -> 2 parallel tiles, ragged last
    #    block handled by Pallas write-masking (no host-side pad/slice).
    x_big = jax.random.normal(kx, (4, 250, d_in), dtype=jnp.float32)
    z3 = jax.block_until_ready(lora_forward(x_big, A, B2, alpha, rank))
    z3_ref = x_big @ ((A @ B2) * (alpha / rank))
    assert z3.shape == (4, 250, d_out)
    assert jnp.allclose(z3, z3_ref, atol=1e-5, rtol=1e-5)

    # 4) Forced small tile (tm=128): 8 grid steps, ragged last block
    #    (1000 = 7*128 + 104) — exercises the multi-step pipeline + masking.
    z4 = jax.block_until_ready(lora_forward(x_big, A, B2, alpha, rank, tm=128))
    assert jnp.allclose(z4, z3_ref, atol=1e-5, rtol=1e-5)

    print("KERNEL_OK")
</pallas_src>

<mosaic_0001>
module attributes {stable_mosaic.version = 11 : i64} {
  func.func @_lora_kernel(%arg0: i32, %arg1: memref<16x32xf32, #tpu.memory_space<vmem>>, %arg2: memref<32x4xf32, #tpu.memory_space<vmem>>, %arg3: memref<4x32xf32, #tpu.memory_space<vmem>>, %arg4: memref<16x32xf32, #tpu.memory_space<vmem>>) attributes {dimension_semantics = [#tpu.dimension_semantics<parallel>], iteration_bounds = array<i64: 1>, scalar_prefetch = 0 : i64, scratch_operands = 0 : i64, tpu.core_type = #tpu.core_type<tc>, window_params = [{transform_indices = @transform_0, window_bounds = array<i64: 16, 32>}, {pipeline_mode = #tpu.pipeline_mode<synchronous>, transform_indices = @transform_1, window_bounds = array<i64: 32, 4>}, {pipeline_mode = #tpu.pipeline_mode<synchronous>, transform_indices = @transform_2, window_bounds = array<i64: 4, 32>}, {transform_indices = @transform_3, window_bounds = array<i64: 16, 32>}]} {
    %c0 = arith.constant 0 : index
    %c0_0 = arith.constant 0 : index
    %0 = vector.load %arg1[%c0, %c0_0] : memref<16x32xf32, #tpu.memory_space<vmem>>, vector<16x32xf32>
    %c0_1 = arith.constant 0 : index
    %c0_2 = arith.constant 0 : index
    %1 = vector.load %arg2[%c0_1, %c0_2] : memref<32x4xf32, #tpu.memory_space<vmem>>, vector<32x4xf32>
    %cst = arith.constant dense<0.000000e+00> : vector<16x4xf32>
    %2 = tpu.matmul %0, %1, %cst {dimension_numbers = #tpu.dot_dimension_numbers<[1], [0], [0], [1], [0, 0, 1, 1], [], []>} : vector<16x32xf32>, vector<32x4xf32>, vector<16x4xf32> -> vector<16x4xf32>
    %cst_3 = arith.constant 2.000000e+00 : f32
    %3 = vector.broadcast %cst_3 : f32 to vector<16x4xf32>
    %4 = arith.mulf %2, %3 : vector<16x4xf32>
    %c0_4 = arith.constant 0 : index
    %c0_5 = arith.constant 0 : index
    %5 = vector.load %arg3[%c0_4, %c0_5] : memref<4x32xf32, #tpu.memory_space<vmem>>, vector<4x32xf32>
    %cst_6 = arith.constant dense<0.000000e+00> : vector<16x32xf32>
    %6 = tpu.matmul %4, %5, %cst_6 {dimension_numbers = #tpu.dot_dimension_numbers<[1], [0], [0], [1], [0, 0, 1, 1], [], []>} : vector<16x4xf32>, vector<4x32xf32>, vector<16x32xf32> -> vector<16x32xf32>
    %c0_7 = arith.constant 0 : index
    %c0_8 = arith.constant 0 : index
    %7 = vector.load %arg4[%c0_7, %c0_8] : memref<16x32xf32, #tpu.memory_space<vmem>>, vector<16x32xf32>
    tpu.vector_store %arg4[%c0_7, %c0_8], %6 {strides = array<i32>} : memref<16x32xf32, #tpu.memory_space<vmem>>, vector<16x32xf32>,
    return
  }
  func.func @transform_0(%arg0: i32) -> (i32, i32) {
    %c0_i32 = arith.constant 0 : i32
    %c0_i32_0 = arith.constant 0 : i32
    return %arg0, %c0_i32 : i32, i32
  }
  func.func @transform_1(%arg0: i32) -> (i32, i32) {
    %c0_i32 = arith.constant 0 : i32
    %c0_i32_0 = arith.constant 0 : i32
    %c0_i32_1 = arith.constant 0 : i32
    return %c0_i32, %c0_i32_0 : i32, i32
  }
  func.func @transform_2(%arg0: i32) -> (i32, i32) {
    %c0_i32 = arith.constant 0 : i32
    %c0_i32_0 = arith.constant 0 : i32
    %c0_i32_1 = arith.constant 0 : i32
    return %c0_i32, %c0_i32_0 : i32, i32
  }
  func.func @transform_3(%arg0: i32) -> (i32, i32) {
    %c0_i32 = arith.constant 0 : i32
    %c0_i32_0 = arith.constant 0 : i32
    return %arg0, %c0_i32 : i32, i32
  }
}

</mosaic_0001>

<bundles_post_ra>
// kernel: tpu_custom_call.1
= control target key start
LH: loop header
LB: loop body
LE: loop exit
PB: predicated region body
PF: predicated region fallthrough
CT: control target
= control target key end

     0   :  { %vm21_vm0 = vcmask 261120   ;;  %s316_s0 = inlined_call_operand.vmem [shape: f32[16,32], index: 0, kind: input, shape index: {}]   ;;  %s317_s1 = inlined_call_operand.vmem [shape: f32[32,4], index: 1, kind: input, shape index: {}]   ;;  %s318_s2 = inlined_call_operand.vmem [shape: f32[4,32], index: 2, kind: input, shape index: {}]   ;;  %s319_s3 = inlined_call_operand.hbm [shape: f32[16,32], index: 3, kind: output, shape index: {}]  }
   0x1   :  { %v20_v0 = vld [vmem:[%s317_s1 + $0x18] sm:$0xff]  ;;  %v19_v1 = vld [vmem:[%s317_s1 + $0x10] sm:$0xff]  ;;  %v15_v2 = vld [vmem:[%s316_s0] sm:$0xff] }
   0x2   :  { %224 = vmatprep.subr.mxu0 %v20_v0  ;;  %v18_v3 = vld [vmem:[%s317_s1 + $0x8] sm:$0xff]  ;;  %232 = vmatprep.mubr.msk.f32.mxu0 %vm21_vm0, %v15_v2 }
   0x3   :  { %225 = vmatpush3.msra.mxu0 %v20_v0 }
   0x4   :  { %8 = vsyncpa [#allocation3], 0  ;;  %226 = vmatprep.subr.mxu0 %v19_v1  ;;  %v17_v4 = vld [vmem:[%s317_s1] sm:$0xff]  ;;  %v16_v5 = vld [vmem:[%s316_s0 + $0x8] sm:$0xff]  ;;  %vm113_vm1 = vcmask 1043456   ;;  %vm106_vm2 = vcmask 31744  }
   0x5   :  { %227 = vmatpush3.msra.mxu0 %v19_v1  ;;  %v105_v6 = vld [vmem:[%s318_s2] sm:$0xf]  ;;  %s265_s1 = smov [#allocation2]  }
   0x6   :  { %228 = vmatprep.subr.mxu0 %v18_v3  ;;  %235 = vmatprep.subr.msk.mxu1 %vm113_vm1, %v105_v6  ;;  %s199_s0 = sshll.u32 %s265_s1, 4  ;;  %s200_s0 = int_to_ptr.vmem [resolvable:$true] %s199_s0 }
   0x7   :  { %229 = vmatpush3.msra.mxu0 %v18_v3  ;;  %236 = vmatpush3.msk.msra.mxu1 %vm113_vm1, %v105_v6  ;;  %s243_s2 = scalar_lea.vmem %s200_s0, 256  ;;  %p248_p1 = scmp.lt.s32.totalorder %s200_s0, %s200_s0 }
   0x8   :  { %230 = vmatprep.subr.mxu0 %v17_v4  ;;  %p244_p0 = scmp.ne.s32.totalorder %s200_s0, %s243_s2  ;;  %p249_p2 = scmp.lt.s32.totalorder %s243_s2, %s243_s2 }
   0x9   :  { %231 = vmatpush3.msra.mxu0 %v17_v4 }
   0xa   :  { %233 = vmatmul.mubr.msk.f32.vlgmr.msra.gmra.mxu0 %vm21_vm0, %v16_v5  ;;  %p250_p3 = por %p249_p2, %p248_p1 }
   0xc   :  { %p251_p4 = pnand %p250_p3, %p244_p0 }
  0xca   :  { %v234_v7 = vpop.f32.mrf.mxu0 }
  0xcb   :  { %v104_v10 = vmul.f32 2.0, %v234_v7 }
  0xcc   :  { %v94_v8 = vpop.f32.mrf.mxu0 }
  0xcd   :  { %v103_v9 = vmul.f32 2.0, %v94_v8 }
  0xcf   :  { %237 = vmatprep.mubr.msk.f32.mxu1 %vm106_vm2, %v103_v9 }
  0xd0   :  { %238 = vmatmul.mubr.msk.f32.vlgmr.msra.gmra.mxu1 %vm106_vm2, %v104_v10 }
 0x190   :  { %v239_v11 = vpop.f32.mrf.mxu1 }
 0x191   :  { %193 = vst.msk [vmem:[#allocation2 + $0x8] sm:$0xff] %vm21_vm0, %v239_v11 }
 0x192   :  { %v183_v12 = vpop.f32.mrf.mxu1 }
 0x193   :  { %192 = vst.msk [vmem:[#allocation2] sm:$0xff] %vm21_vm0, %v183_v12 }
 0x194   :  { %254 = shalt.err (!%p251_p4)
}
 0x195   :  { %s266_s26 = smov 128   ;;  %s267_s27 = smov 8  }
 0x196   :  { %205 = dma.vmem_to_hbm [thread:$0]  %s200_s0, 256, %s319_s3, [#allocation3], %s266_s26, %s266_s26, %s267_s27  }
 0x197   :  { %263 = dma.done.wait [#allocation3], 256  }
 0x198   :  { %264 = vsyncadd [#allocation3], 4294967040 }
 0x199   :  { %209 = vsyncpa [#allocation3], 1 }

</bundles_post_ra>
